<compile_context>
chip_gen: v7x
topology: tpu7x:2x2x1
jax: 0.10.0
libtpu: 0.0.40
codegen_flags: <defaults>
</compile_context>

<pallas_src>
import functools

import jax
import jax.numpy as jnp
from jax.experimental import pallas as pl
from jax.experimental.pallas import tpu as pltpu

EPS = 1e-5


def _basic_dilation_block_kernel(x_ref, w1_ref, sh1_ref, w2_ref, sh2_ref,
                                 o_ref, *, H, W):
    # x_ref : (1, Cp, Mtot)   input, flat "CHW" layout; Mtot = Nb * H * W
    # w*_ref: (9, Cp, Ci)     conv weights (BN scale folded), tap t = kh*3 + kw
    # sh*   : (Cp, 1)         folded conv-bias + BN shift
    # o_ref : (1, Cp, Mtot)   output, flat "CHW" layout
    Mtot = x_ref.shape[2]
    M = H * W
    x = x_ref[0]                                            # (Cp, Mtot) f32

    # Lane index -> per-image spatial coords (only needed for zero-pad masks).
    # Built at (1, Mtot) and broadcast in jnp.where — cost independent of C.
    lane = jax.lax.broadcasted_iota(jnp.int32, (1, Mtot), 1)
    idx = (lane & (M - 1)) if (M & (M - 1) == 0) else (lane % M)
    w_idx = (idx & (W - 1)) if (W & (W - 1) == 0) else (idx % W)

    def tap_mask(dh, dw):
        # validity of tap (dh, dw) for every output position (zero padding).
        conds = []
        if dh < 0:
            conds.append(idx >= W)                          # h - 1 >= 0
        if dh > 0:
            conds.append(idx < M - W)                       # h + 1 <  H
        if dw < 0:
            conds.append(w_idx >= 1)                        # w - 1 >= 0
        if dw > 0:
            conds.append(w_idx <= W - 2)                    # w + 1 <  W
        m = conds[0]
        for c in conds[1:]:
            m = m & c
        return m

    masks = {(dh, dw): tap_mask(dh, dw)
             for dh in (-1, 0, 1) for dw in (-1, 0, 1) if (dh, dw) != (0, 0)}

    def conv3x3(z, w_ref, sh_ref):
        # Per-tap accumulated matmuls: no (9C, M) im2col slab is materialized.
        # Roll (XLU) + boundary mask reproduce nn.Conv2d zero padding exactly;
        # rolls that wrap across image boundaries land only on masked positions.
        acc = None
        for kh in range(3):
            for kw in range(3):
                dh, dw = kh - 1, kw - 1
                d = dh * W + dw                             # flat shift for tap
                t = z if d == 0 else pltpu.roll(z, (-d) % Mtot, axis=1)
                if (dh, dw) != (0, 0):
                    t = jnp.where(masks[(dh, dw)], t, 0.0)
                p = jnp.dot(w_ref[kh * 3 + kw], t,
                            preferred_element_type=jnp.float32)
                acc = p if acc is None else acc + p
        return acc + sh_ref[...]

    # conv1 + (folded) BN1 + ReLU
    y = jnp.maximum(conv3x3(x, w1_ref, sh1_ref), 0.0)
    # conv2 + (folded) BN2
    y2 = conv3x3(y, w2_ref, sh2_ref)
    # identity residual (downsample=None) + ReLU
    o_ref[0] = jnp.maximum(y2 + x, 0.0)


def _pick_images_per_block(N, Cpad, M, max_block_bytes=4 * 1024 * 1024):
    """Largest divisor of N packed per grid step, keeping >= 2 grid steps
    (both v7x TensorCores busy) and the per-step slab under a VMEM budget."""
    target_steps = 2 if N >= 2 else 1
    best = 1
    for nb in range(1, N + 1):
        if N % nb:
            continue
        if N // nb < target_steps:
            continue
        if Cpad * nb * M * 4 > max_block_bytes:
            continue
        best = nb
    return best


def basic_dilation_block(x_nchw, params):
    """x_nchw: (N, C, H, W) float32. params use PyTorch layouts (OIHW weights).
    Inference-mode BatchNorm. Returns (N, C, H, W) float32."""
    x_nchw = x_nchw.astype(jnp.float32)
    N, C, H, W = x_nchw.shape
    M = H * W
    Cout = params['w1'].shape[0]
    # downsample is None -> identity residual requires matching channel counts.
    assert Cout == C and params['w1'].shape[1] == C, \
        "identity residual requires inplanes == planes"

    # Pad channels to a full sublane tile (multiple of 8); padded channels are
    # exactly zero throughout the block and sliced off at the end.
    Cpad = max(8, ((C + 7) // 8) * 8)

    def fold(w_oihw, bias, gamma, beta, mean, var):
        scale = gamma / jnp.sqrt(var + EPS)                 # (C,)
        shift = (bias - mean) * scale + beta                # (C,)
        # (Cout, Cin, 3, 3) -> (9, Cout, Cin), tap index t = kh*3 + kw,
        # BN scale folded into output-channel rows, zero-padded to Cpad.
        w_t = jnp.transpose(w_oihw, (2, 3, 0, 1)).reshape(9, C, C)
        w_t = w_t * scale[None, :, None]
        w_t = jnp.pad(w_t, ((0, 0), (0, Cpad - C), (0, Cpad - C)))
        sh = jnp.pad(shift, (0, Cpad - C)).reshape(Cpad, 1)
        return w_t.astype(jnp.float32), sh.astype(jnp.float32)

    w1m, sh1 = fold(params['w1'], params['b1'], params['g1'],
                    params['beta1'], params['m1'], params['v1'])
    w2m, sh2 = fold(params['w2'], params['b2'], params['g2'],
                    params['beta2'], params['m2'], params['v2'])

    # Channel-pad the input and pack Nb images into the lane dimension.
    Nb = _pick_images_per_block(N, Cpad, M)
    G = N // Nb
    Mtot = Nb * M
    x_pad = jnp.pad(x_nchw, ((0, 0), (0, Cpad - C), (0, 0), (0, 0)))
    x_flat = x_pad.reshape(N, Cpad, M)
    x_packed = (x_flat.reshape(G, Nb, Cpad, M)
                .transpose(0, 2, 1, 3)
                .reshape(G, Cpad, Mtot))                    # lane-dense slabs

    flops = 2 * (2 * Cpad * Cpad * 9 * M) * N               # two convs
    bytes_accessed = (2 * N * Cpad * M * 4                  # x in + out
                      + 2 * (9 * Cpad * Cpad + Cpad) * 4)   # weights + shifts

    kernel = functools.partial(_basic_dilation_block_kernel, H=H, W=W)
    out = pl.pallas_call(
        kernel,
        out_shape=jax.ShapeDtypeStruct((G, Cpad, Mtot), jnp.float32),
        grid_spec=pltpu.PrefetchScalarGridSpec(
            num_scalar_prefetch=0,
            grid=(G,),
            in_specs=[
                pl.BlockSpec((1, Cpad, Mtot), lambda n: (n, 0, 0)),
                pl.BlockSpec((9, Cpad, Cpad), lambda n: (0, 0, 0)),
                pl.BlockSpec((Cpad, 1), lambda n: (0, 0)),
                pl.BlockSpec((9, Cpad, Cpad), lambda n: (0, 0, 0)),
                pl.BlockSpec((Cpad, 1), lambda n: (0, 0)),
            ],
            out_specs=pl.BlockSpec((1, Cpad, Mtot), lambda n: (n, 0, 0)),
        ),
        compiler_params=pltpu.CompilerParams(
            dimension_semantics=("parallel",),
            vmem_limit_bytes=32 * 1024 * 1024),
        cost_estimate=pl.CostEstimate(flops=flops,
                                      transcendentals=0,
                                      bytes_accessed=bytes_accessed),
    )(x_packed, w1m, sh1, w2m, sh2)

    # Unpack lanes -> images, drop channel padding, restore NCHW.
    out = (out.reshape(G, Cpad, Nb, M)
           .transpose(0, 2, 1, 3)
           .reshape(N, Cpad, M))
    return out[:, :C, :].reshape(N, C, H, W)


def _reference(x, p):
    """Pure-JAX reference (inference-mode BN), NCHW / OIHW like PyTorch."""
    def conv(z, w, b):
        y = jax.lax.conv_general_dilated(
            z, w, window_strides=(1, 1), padding=[(1, 1), (1, 1)],
            dimension_numbers=('NCHW', 'OIHW', 'NCHW'))
        return y + b[None, :, None, None]

    def bn(z, g, be, m, v):
        inv = (g / jnp.sqrt(v + EPS))[None, :, None, None]
        return (z - m[None, :, None, None]) * inv + be[None, :, None, None]

    out = jnp.maximum(bn(conv(x, p['w1'], p['b1']),
                         p['g1'], p['beta1'], p['m1'], p['v1']), 0.0)
    out = bn(conv(out, p['w2'], p['b2']),
             p['g2'], p['beta2'], p['m2'], p['v2'])
    return jnp.maximum(out + x, 0.0)


if __name__ == "__main__":
    key = jax.random.PRNGKey(0)
    N, C, H, W = 2, 4, 16, 16          # inplanes == planes == 4
    ks = jax.random.split(key, 13)

    params = {
        'w1': jax.random.normal(ks[0], (C, C, 3, 3), jnp.float32) * 0.1,   # OIHW
        'b1': jax.random.normal(ks[1], (C,), jnp.float32) * 0.1,
        'g1': 1.0 + 0.1 * jax.random.normal(ks[2], (C,), jnp.float32),
        'beta1': 0.1 * jax.random.normal(ks[3], (C,), jnp.float32),
        'm1': 0.1 * jax.random.normal(ks[4], (C,), jnp.float32),
        'v1': 1.0 + 0.1 * jax.random.uniform(ks[5], (C,), jnp.float32),
        'w2': jax.random.normal(ks[6], (C, C, 3, 3), jnp.float32) * 0.1,   # OIHW
        'b2': jax.random.normal(ks[7], (C,), jnp.float32) * 0.1,
        'g2': 1.0 + 0.1 * jax.random.normal(ks[8], (C,), jnp.float32),
        'beta2': 0.1 * jax.random.normal(ks[9], (C,), jnp.float32),
        'm2': 0.1 * jax.random.normal(ks[10], (C,), jnp.float32),
        'v2': 1.0 + 0.1 * jax.random.uniform(ks[11], (C,), jnp.float32),
    }

    x = jax.random.normal(ks[12], (N, C, H, W), jnp.float32)

    out = jax.block_until_ready(basic_dilation_block(x, params))
    ref = _reference(x, params)

    assert out.shape == (N, C, H, W)
    err = jnp.max(jnp.abs(out - ref))
    assert jnp.allclose(out, ref, rtol=1e-4, atol=1e-4), f"max abs err {err}"

    print("KERNEL_OK")
</pallas_src>

<mosaic_0001>
module attributes {stable_mosaic.version = 11 : i64} {
  func.func @_basic_dilation_block_kernel(%arg0: i32, %arg1: memref<1x8x256xf32, #tpu.memory_space<vmem>>, %arg2: memref<9x8x8xf32, #tpu.memory_space<vmem>>, %arg3: memref<8x1xf32, #tpu.memory_space<vmem>>, %arg4: memref<9x8x8xf32, #tpu.memory_space<vmem>>, %arg5: memref<8x1xf32, #tpu.memory_space<vmem>>, %arg6: memref<1x8x256xf32, #tpu.memory_space<vmem>>) attributes {dimension_semantics = [#tpu.dimension_semantics<parallel>], iteration_bounds = array<i64: 2>, scalar_prefetch = 0 : i64, scratch_operands = 0 : i64, tpu.core_type = #tpu.core_type<tc>, window_params = [{transform_indices = @transform_0, window_bounds = array<i64: 1, 8, 256>}, {pipeline_mode = #tpu.pipeline_mode<synchronous>, transform_indices = @transform_1, window_bounds = array<i64: 9, 8, 8>}, {pipeline_mode = #tpu.pipeline_mode<synchronous>, transform_indices = @transform_2, window_bounds = array<i64: 8, 1>}, {pipeline_mode = #tpu.pipeline_mode<synchronous>, transform_indices = @transform_3, window_bounds = array<i64: 9, 8, 8>}, {pipeline_mode = #tpu.pipeline_mode<synchronous>, transform_indices = @transform_4, window_bounds = array<i64: 8, 1>}, {transform_indices = @transform_5, window_bounds = array<i64: 1, 8, 256>}]} {
    %c0 = arith.constant 0 : index
    %c0_0 = arith.constant 0 : index
    %c0_1 = arith.constant 0 : index
    %0 = vector.load %arg1[%c0, %c0_0, %c0_1] : memref<1x8x256xf32, #tpu.memory_space<vmem>>, vector<1x8x256xf32>
    %1 = vector.shape_cast %0 : vector<1x8x256xf32> to vector<8x256xf32>
    %2 = tpu.iota {dimensions = array<i32: 1>} : vector<1x256xi32>
    %c255_i32 = arith.constant 255 : i32
    %3 = vector.broadcast %c255_i32 : i32 to vector<1x256xi32>
    %4 = arith.andi %2, %3 : vector<1x256xi32>
    %c15_i32 = arith.constant 15 : i32
    %5 = vector.broadcast %c15_i32 : i32 to vector<1x256xi32>
    %6 = arith.andi %4, %5 : vector<1x256xi32>
    %c16_i32 = arith.constant 16 : i32
    %7 = vector.broadcast %c16_i32 : i32 to vector<1x256xi32>
    %8 = arith.cmpi sge, %4, %7 : vector<1x256xi32>
    %c1_i32 = arith.constant 1 : i32
    %9 = vector.broadcast %c1_i32 : i32 to vector<1x256xi32>
    %10 = arith.cmpi sge, %6, %9 : vector<1x256xi32>
    %11 = arith.andi %8, %10 : vector<1x256xi1>
    %c16_i32_2 = arith.constant 16 : i32
    %12 = vector.broadcast %c16_i32_2 : i32 to vector<1x256xi32>
    %13 = arith.cmpi sge, %4, %12 : vector<1x256xi32>
    %c16_i32_3 = arith.constant 16 : i32
    %14 = vector.broadcast %c16_i32_3 : i32 to vector<1x256xi32>
    %15 = arith.cmpi sge, %4, %14 : vector<1x256xi32>
    %c14_i32 = arith.constant 14 : i32
    %16 = vector.broadcast %c14_i32 : i32 to vector<1x256xi32>
    %17 = arith.cmpi sle, %6, %16 : vector<1x256xi32>
    %18 = arith.andi %15, %17 : vector<1x256xi1>
    %c1_i32_4 = arith.constant 1 : i32
    %19 = vector.broadcast %c1_i32_4 : i32 to vector<1x256xi32>
    %20 = arith.cmpi sge, %6, %19 : vector<1x256xi32>
    %c14_i32_5 = arith.constant 14 : i32
    %21 = vector.broadcast %c14_i32_5 : i32 to vector<1x256xi32>
    %22 = arith.cmpi sle, %6, %21 : vector<1x256xi32>
    %c240_i32 = arith.constant 240 : i32
    %23 = vector.broadcast %c240_i32 : i32 to vector<1x256xi32>
    %24 = arith.cmpi slt, %4, %23 : vector<1x256xi32>
    %c1_i32_6 = arith.constant 1 : i32
    %25 = vector.broadcast %c1_i32_6 : i32 to vector<1x256xi32>
    %26 = arith.cmpi sge, %6, %25 : vector<1x256xi32>
    %27 = arith.andi %24, %26 : vector<1x256xi1>
    %c240_i32_7 = arith.constant 240 : i32
    %28 = vector.broadcast %c240_i32_7 : i32 to vector<1x256xi32>
    %29 = arith.cmpi slt, %4, %28 : vector<1x256xi32>
    %c240_i32_8 = arith.constant 240 : i32
    %30 = vector.broadcast %c240_i32_8 : i32 to vector<1x256xi32>
    %31 = arith.cmpi slt, %4, %30 : vector<1x256xi32>
    %c14_i32_9 = arith.constant 14 : i32
    %32 = vector.broadcast %c14_i32_9 : i32 to vector<1x256xi32>
    %33 = arith.cmpi sle, %6, %32 : vector<1x256xi32>
    %34 = arith.andi %31, %33 : vector<1x256xi1>
    %c17_i32 = arith.constant 17 : i32
    %35 = tpu.dynamic_rotate %1 by %c17_i32 dim 1 : vector<8x256xf32>, i32 -> vector<8x256xf32>
    %cst = arith.constant 0.000000e+00 : f32
    %36 = vector.shape_cast %11 : vector<1x256xi1> to vector<1x256xi1>
    %37 = vector.broadcast %36 : vector<1x256xi1> to vector<8x256xi1>
    %38 = vector.broadcast %cst : f32 to vector<8x256xf32>
    %39 = arith.select %37, %35, %38 : vector<8x256xi1>, vector<8x256xf32>
    %c0_10 = arith.constant 0 : index
    %c0_11 = arith.constant 0 : index
    %c0_12 = arith.constant 0 : index
    %40 = vector.load %arg2[%c0_10, %c0_11, %c0_12] : memref<9x8x8xf32, #tpu.memory_space<vmem>>, vector<1x8x8xf32>
    %41 = vector.shape_cast %40 : vector<1x8x8xf32> to vector<8x8xf32>
    %cst_13 = arith.constant dense<0.000000e+00> : vector<8x256xf32>
    %42 = tpu.matmul %41, %39, %cst_13 {dimension_numbers = #tpu.dot_dimension_numbers<[1], [0], [0], [1], [0, 0, 1, 1], [], []>} : vector<8x8xf32>, vector<8x256xf32>, vector<8x256xf32> -> vector<8x256xf32>
    %c16_i32_14 = arith.constant 16 : i32
    %43 = tpu.dynamic_rotate %1 by %c16_i32_14 dim 1 : vector<8x256xf32>, i32 -> vector<8x256xf32>
    %cst_15 = arith.constant 0.000000e+00 : f32
    %44 = vector.shape_cast %13 : vector<1x256xi1> to vector<1x256xi1>
    %45 = vector.broadcast %44 : vector<1x256xi1> to vector<8x256xi1>
    %46 = vector.broadcast %cst_15 : f32 to vector<8x256xf32>
    %47 = arith.select %45, %43, %46 : vector<8x256xi1>, vector<8x256xf32>
    %c1 = arith.constant 1 : index
    %c0_16 = arith.constant 0 : index
    %c0_17 = arith.constant 0 : index
    %48 = vector.load %arg2[%c1, %c0_16, %c0_17] : memref<9x8x8xf32, #tpu.memory_space<vmem>>, vector<1x8x8xf32>
    %49 = vector.shape_cast %48 : vector<1x8x8xf32> to vector<8x8xf32>
    %cst_18 = arith.constant dense<0.000000e+00> : vector<8x256xf32>
    %50 = tpu.matmul %49, %47, %cst_18 {dimension_numbers = #tpu.dot_dimension_numbers<[1], [0], [0], [1], [0, 0, 1, 1], [], []>} : vector<8x8xf32>, vector<8x256xf32>, vector<8x256xf32> -> vector<8x256xf32>
    %51 = arith.addf %42, %50 : vector<8x256xf32>
    %c15_i32_19 = arith.constant 15 : i32
    %52 = tpu.dynamic_rotate %1 by %c15_i32_19 dim 1 : vector<8x256xf32>, i32 -> vector<8x256xf32>
    %cst_20 = arith.constant 0.000000e+00 : f32
    %53 = vector.shape_cast %18 : vector<1x256xi1> to vector<1x256xi1>
    %54 = vector.broadcast %53 : vector<1x256xi1> to vector<8x256xi1>
    %55 = vector.broadcast %cst_20 : f32 to vector<8x256xf32>
    %56 = arith.select %54, %52, %55 : vector<8x256xi1>, vector<8x256xf32>
    %c2 = arith.constant 2 : index
    %c0_21 = arith.constant 0 : index
    %c0_22 = arith.constant 0 : index
    %57 = vector.load %arg2[%c2, %c0_21, %c0_22] : memref<9x8x8xf32, #tpu.memory_space<vmem>>, vector<1x8x8xf32>
    %58 = vector.shape_cast %57 : vector<1x8x8xf32> to vector<8x8xf32>
    %cst_23 = arith.constant dense<0.000000e+00> : vector<8x256xf32>
    %59 = tpu.matmul %58, %56, %cst_23 {dimension_numbers = #tpu.dot_dimension_numbers<[1], [0], [0], [1], [0, 0, 1, 1], [], []>} : vector<8x8xf32>, vector<8x256xf32>, vector<8x256xf32> -> vector<8x256xf32>
    %60 = arith.addf %51, %59 : vector<8x256xf32>
    %c1_i32_24 = arith.constant 1 : i32
    %61 = tpu.dynamic_rotate %1 by %c1_i32_24 dim 1 : vector<8x256xf32>, i32 -> vector<8x256xf32>
    %cst_25 = arith.constant 0.000000e+00 : f32
    %62 = vector.shape_cast %20 : vector<1x256xi1> to vector<1x256xi1>
    %63 = vector.broadcast %62 : vector<1x256xi1> to vector<8x256xi1>
    %64 = vector.broadcast %cst_25 : f32 to vector<8x256xf32>
    %65 = arith.select %63, %61, %64 : vector<8x256xi1>, vector<8x256xf32>
    %c3 = arith.constant 3 : index
    %c0_26 = arith.constant 0 : index
    %c0_27 = arith.constant 0 : index
    %66 = vector.load %arg2[%c3, %c0_26, %c0_27] : memref<9x8x8xf32, #tpu.memory_space<vmem>>, vector<1x8x8xf32>
    %67 = vector.shape_cast %66 : vector<1x8x8xf32> to vector<8x8xf32>
    %cst_28 = arith.constant dense<0.000000e+00> : vector<8x256xf32>
    %68 = tpu.matmul %67, %65, %cst_28 {dimension_numbers = #tpu.dot_dimension_numbers<[1], [0], [0], [1], [0, 0, 1, 1], [], []>} : vector<8x8xf32>, vector<8x256xf32>, vector<8x256xf32> -> vector<8x256xf32>
    %69 = arith.addf %60, %68 : vector<8x256xf32>
    %c4 = arith.constant 4 : index
    %c0_29 = arith.constant 0 : index
    %c0_30 = arith.constant 0 : index
    %70 = vector.load %arg2[%c4, %c0_29, %c0_30] : memref<9x8x8xf32, #tpu.memory_space<vmem>>, vector<1x8x8xf32>
    %71 = vector.shape_cast %70 : vector<1x8x8xf32> to vector<8x8xf32>
    %cst_31 = arith.constant dense<0.000000e+00> : vector<8x256xf32>
    %72 = tpu.matmul %71, %1, %cst_31 {dimension_numbers = #tpu.dot_dimension_numbers<[1], [0], [0], [1], [0, 0, 1, 1], [], []>} : vector<8x8xf32>, vector<8x256xf32>, vector<8x256xf32> -> vector<8x256xf32>
    %73 = arith.addf %69, %72 : vector<8x256xf32>
    %c255_i32_32 = arith.constant 255 : i32
    %74 = tpu.dynamic_rotate %1 by %c255_i32_32 dim 1 : vector<8x256xf32>, i32 -> vector<8x256xf32>
    %cst_33 = arith.constant 0.000000e+00 : f32
    %75 = vector.shape_cast %22 : vector<1x256xi1> to vector<1x256xi1>
    %76 = vector.broadcast %75 : vector<1x256xi1> to vector<8x256xi1>
    %77 = vector.broadcast %cst_33 : f32 to vector<8x256xf32>
    %78 = arith.select %76, %74, %77 : vector<8x256xi1>, vector<8x256xf32>
    %c5 = arith.constant 5 : index
    %c0_34 = arith.constant 0 : index
    %c0_35 = arith.constant 0 : index
    %79 = vector.load %arg2[%c5, %c0_34, %c0_35] : memref<9x8x8xf32, #tpu.memory_space<vmem>>, vector<1x8x8xf32>
    %80 = vector.shape_cast %79 : vector<1x8x8xf32> to vector<8x8xf32>
    %cst_36 = arith.constant dense<0.000000e+00> : vector<8x256xf32>
    %81 = tpu.matmul %80, %78, %cst_36 {dimension_numbers = #tpu.dot_dimension_numbers<[1], [0], [0], [1], [0, 0, 1, 1], [], []>} : vector<8x8xf32>, vector<8x256xf32>, vector<8x256xf32> -> vector<8x256xf32>
    %82 = arith.addf %73, %81 : vector<8x256xf32>
    %c241_i32 = arith.constant 241 : i32
    %83 = tpu.dynamic_rotate %1 by %c241_i32 dim 1 : vector<8x256xf32>, i32 -> vector<8x256xf32>
    %cst_37 = arith.constant 0.000000e+00 : f32
    %84 = vector.shape_cast %27 : vector<1x256xi1> to vector<1x256xi1>
    %85 = vector.broadcast %84 : vector<1x256xi1> to vector<8x256xi1>
    %86 = vector.broadcast %cst_37 : f32 to vector<8x256xf32>
    %87 = arith.select %85, %83, %86 : vector<8x256xi1>, vector<8x256xf32>
    %c6 = arith.constant 6 : index
    %c0_38 = arith.constant 0 : index
    %c0_39 = arith.constant 0 : index
    %88 = vector.load %arg2[%c6, %c0_38, %c0_39] : memref<9x8x8xf32, #tpu.memory_space<vmem>>, vector<1x8x8xf32>
    %89 = vector.shape_cast %88 : vector<1x8x8xf32> to vector<8x8xf32>
    %cst_40 = arith.constant dense<0.000000e+00> : vector<8x256xf32>
    %90 = tpu.matmul %89, %87, %cst_40 {dimension_numbers = #tpu.dot_dimension_numbers<[1], [0], [0], [1], [0, 0, 1, 1], [], []>} : vector<8x8xf32>, vector<8x256xf32>, vector<8x256xf32> -> vector<8x256xf32>
    %91 = arith.addf %82, %90 : vector<8x256xf32>
    %c240_i32_41 = arith.constant 240 : i32
    %92 = tpu.dynamic_rotate %1 by %c240_i32_41 dim 1 : vector<8x256xf32>, i32 -> vector<8x256xf32>
    %cst_42 = arith.constant 0.000000e+00 : f32
    %93 = vector.shape_cast %29 : vector<1x256xi1> to vector<1x256xi1>
    %94 = vector.broadcast %93 : vector<1x256xi1> to vector<8x256xi1>
    %95 = vector.broadcast %cst_42 : f32 to vector<8x256xf32>
    %96 = arith.select %94, %92, %95 : vector<8x256xi1>, vector<8x256xf32>
    %c7 = arith.constant 7 : index
    %c0_43 = arith.constant 0 : index
    %c0_44 = arith.constant 0 : index
    %97 = vector.load %arg2[%c7, %c0_43, %c0_44] : memref<9x8x8xf32, #tpu.memory_space<vmem>>, vector<1x8x8xf32>
    %98 = vector.shape_cast %97 : vector<1x8x8xf32> to vector<8x8xf32>
    %cst_45 = arith.constant dense<0.000000e+00> : vector<8x256xf32>
    %99 = tpu.matmul %98, %96, %cst_45 {dimension_numbers = #tpu.dot_dimension_numbers<[1], [0], [0], [1], [0, 0, 1, 1], [], []>} : vector<8x8xf32>, vector<8x256xf32>, vector<8x256xf32> -> vector<8x256xf32>
    %100 = arith.addf %91, %99 : vector<8x256xf32>
    %c239_i32 = arith.constant 239 : i32
    %101 = tpu.dynamic_rotate %1 by %c239_i32 dim 1 : vector<8x256xf32>, i32 -> vector<8x256xf32>
    %cst_46 = arith.constant 0.000000e+00 : f32
    %102 = vector.shape_cast %34 : vector<1x256xi1> to vector<1x256xi1>
    %103 = vector.broadcast %102 : vector<1x256xi1> to vector<8x256xi1>
    %104 = vector.broadcast %cst_46 : f32 to vector<8x256xf32>
    %105 = arith.select %103, %101, %104 : vector<8x256xi1>, vector<8x256xf32>
    %c8 = arith.constant 8 : index
    %c0_47 = arith.constant 0 : index
    %c0_48 = arith.constant 0 : index
    %106 = vector.load %arg2[%c8, %c0_47, %c0_48] : memref<9x8x8xf32, #tpu.memory_space<vmem>>, vector<1x8x8xf32>
    %107 = vector.shape_cast %106 : vector<1x8x8xf32> to vector<8x8xf32>
    %cst_49 = arith.constant dense<0.000000e+00> : vector<8x256xf32>
    %108 = tpu.matmul %107, %105, %cst_49 {dimension_numbers = #tpu.dot_dimension_numbers<[1], [0], [0], [1], [0, 0, 1, 1], [], []>} : vector<8x8xf32>, vector<8x256xf32>, vector<8x256xf32> -> vector<8x256xf32>
    %109 = arith.addf %100, %108 : vector<8x256xf32>
    %c0_50 = arith.constant 0 : index
    %c0_51 = arith.constant 0 : index
    %110 = vector.load %arg3[%c0_50, %c0_51] : memref<8x1xf32, #tpu.memory_space<vmem>>, vector<8x1xf32>
    %111 = vector.broadcast %110 : vector<8x1xf32> to vector<8x256xf32>
    %112 = arith.addf %109, %111 : vector<8x256xf32>
    %cst_52 = arith.constant 0.000000e+00 : f32
    %113 = vector.broadcast %cst_52 : f32 to vector<8x256xf32>
    %114 = arith.maximumf %112, %113 : vector<8x256xf32>
    %c17_i32_53 = arith.constant 17 : i32
    %115 = tpu.dynamic_rotate %114 by %c17_i32_53 dim 1 : vector<8x256xf32>, i32 -> vector<8x256xf32>
    %cst_54 = arith.constant 0.000000e+00 : f32
    %116 = vector.shape_cast %11 : vector<1x256xi1> to vector<1x256xi1>
    %117 = vector.broadcast %116 : vector<1x256xi1> to vector<8x256xi1>
    %118 = vector.broadcast %cst_54 : f32 to vector<8x256xf32>
    %119 = arith.select %117, %115, %118 : vector<8x256xi1>, vector<8x256xf32>
    %c0_55 = arith.constant 0 : index
    %c0_56 = arith.constant 0 : index
    %c0_57 = arith.constant 0 : index
    %120 = vector.load %arg4[%c0_55, %c0_56, %c0_57] : memref<9x8x8xf32, #tpu.memory_space<vmem>>, vector<1x8x8xf32>
    %121 = vector.shape_cast %120 : vector<1x8x8xf32> to vector<8x8xf32>
    %cst_58 = arith.constant dense<0.000000e+00> : vector<8x256xf32>
    %122 = tpu.matmul %121, %119, %cst_58 {dimension_numbers = #tpu.dot_dimension_numbers<[1], [0], [0], [1], [0, 0, 1, 1], [], []>} : vector<8x8xf32>, vector<8x256xf32>, vector<8x256xf32> -> vector<8x256xf32>
    %c16_i32_59 = arith.constant 16 : i32
    %123 = tpu.dynamic_rotate %114 by %c16_i32_59 dim 1 : vector<8x256xf32>, i32 -> vector<8x256xf32>
    %cst_60 = arith.constant 0.000000e+00 : f32
    %124 = vector.shape_cast %13 : vector<1x256xi1> to vector<1x256xi1>
    %125 = vector.broadcast %124 : vector<1x256xi1> to vector<8x256xi1>
    %126 = vector.broadcast %cst_60 : f32 to vector<8x256xf32>
    %127 = arith.select %125, %123, %126 : vector<8x256xi1>, vector<8x256xf32>
    %c1_61 = arith.constant 1 : index
    %c0_62 = arith.constant 0 : index
    %c0_63 = arith.constant 0 : index
    %128 = vector.load %arg4[%c1_61, %c0_62, %c0_63] : memref<9x8x8xf32, #tpu.memory_space<vmem>>, vector<1x8x8xf32>
    %129 = vector.shape_cast %128 : vector<1x8x8xf32> to vector<8x8xf32>
    %cst_64 = arith.constant dense<0.000000e+00> : vector<8x256xf32>
    %130 = tpu.matmul %129, %127, %cst_64 {dimension_numbers = #tpu.dot_dimension_numbers<[1], [0], [0], [1], [0, 0, 1, 1], [], []>} : vector<8x8xf32>, vector<8x256xf32>, vector<8x256xf32> -> vector<8x256xf32>
    %131 = arith.addf %122, %130 : vector<8x256xf32>
    %c15_i32_65 = arith.constant 15 : i32
    %132 = tpu.dynamic_rotate %114 by %c15_i32_65 dim 1 : vector<8x256xf32>, i32 -> vector<8x256xf32>
    %cst_66 = arith.constant 0.000000e+00 : f32
    %133 = vector.shape_cast %18 : vector<1x256xi1> to vector<1x256xi1>
    %134 = vector.broadcast %133 : vector<1x256xi1> to vector<8x256xi1>
    %135 = vector.broadcast %cst_66 : f32 to vector<8x256xf32>
    %136 = arith.select %134, %132, %135 : vector<8x256xi1>, vector<8x256xf32>
    %c2_67 = arith.constant 2 : index
    %c0_68 = arith.constant 0 : index
    %c0_69 = arith.constant 0 : index
    %137 = vector.load %arg4[%c2_67, %c0_68, %c0_69] : memref<9x8x8xf32, #tpu.memory_space<vmem>>, vector<1x8x8xf32>
    %138 = vector.shape_cast %137 : vector<1x8x8xf32> to vector<8x8xf32>
    %cst_70 = arith.constant dense<0.000000e+00> : vector<8x256xf32>
    %139 = tpu.matmul %138, %136, %cst_70 {dimension_numbers = #tpu.dot_dimension_numbers<[1], [0], [0], [1], [0, 0, 1, 1], [], []>} : vector<8x8xf32>, vector<8x256xf32>, vector<8x256xf32> -> vector<8x256xf32>
    %140 = arith.addf %131, %139 : vector<8x256xf32>
    %c1_i32_71 = arith.constant 1 : i32
    %141 = tpu.dynamic_rotate %114 by %c1_i32_71 dim 1 : vector<8x256xf32>, i32 -> vector<8x256xf32>
    %cst_72 = arith.constant 0.000000e+00 : f32
    %142 = vector.shape_cast %20 : vector<1x256xi1> to vector<1x256xi1>
    %143 = vector.broadcast %142 : vector<1x256xi1> to vector<8x256xi1>
    %144 = vector.broadcast %cst_72 : f32 to vector<8x256xf32>
    %145 = arith.select %143, %141, %144 : vector<8x256xi1>, vector<8x256xf32>
    %c3_73 = arith.constant 3 : index
    %c0_74 = arith.constant 0 : index
    %c0_75 = arith.constant 0 : index
    %146 = vector.load %arg4[%c3_73, %c0_74, %c0_75] : memref<9x8x8xf32, #tpu.memory_space<vmem>>, vector<1x8x8xf32>
    %147 = vector.shape_cast %146 : vector<1x8x8xf32> to vector<8x8xf32>
    %cst_76 = arith.constant dense<0.000000e+00> : vector<8x256xf32>
    %148 = tpu.matmul %147, %145, %cst_76 {dimension_numbers = #tpu.dot_dimension_numbers<[1], [0], [0], [1], [0, 0, 1, 1], [], []>} : vector<8x8xf32>, vector<8x256xf32>, vector<8x256xf32> -> vector<8x256xf32>
    %149 = arith.addf %140, %148 : vector<8x256xf32>
    %c4_77 = arith.constant 4 : index
    %c0_78 = arith.constant 0 : index
    %c0_79 = arith.constant 0 : index
    %150 = vector.load %arg4[%c4_77, %c0_78, %c0_79] : memref<9x8x8xf32, #tpu.memory_space<vmem>>, vector<1x8x8xf32>
    %151 = vector.shape_cast %150 : vector<1x8x8xf32> to vector<8x8xf32>
    %cst_80 = arith.constant dense<0.000000e+00> : vector<8x256xf32>
    %152 = tpu.matmul %151, %114, %cst_80 {dimension_numbers = #tpu.dot_dimension_numbers<[1], [0], [0], [1], [0, 0, 1, 1], [], []>} : vector<8x8xf32>, vector<8x256xf32>, vector<8x256xf32> -> vector<8x256xf32>
    %153 = arith.addf %149, %152 : vector<8x256xf32>
    %c255_i32_81 = arith.constant 255 : i32
    %154 = tpu.dynamic_rotate %114 by %c255_i32_81 dim 1 : vector<8x256xf32>, i32 -> vector<8x256xf32>
    %cst_82 = arith.constant 0.000000e+00 : f32
    %155 = vector.shape_cast %22 : vector<1x256xi1> to vector<1x256xi1>
    %156 = vector.broadcast %155 : vector<1x256xi1> to vector<8x256xi1>
    %157 = vector.broadcast %cst_82 : f32 to vector<8x256xf32>
    %158 = arith.select %156, %154, %157 : vector<8x256xi1>, vector<8x256xf32>
    %c5_83 = arith.constant 5 : index
    %c0_84 = arith.constant 0 : index
    %c0_85 = arith.constant 0 : index
    %159 = vector.load %arg4[%c5_83, %c0_84, %c0_85] : memref<9x8x8xf32, #tpu.memory_space<vmem>>, vector<1x8x8xf32>
    %160 = vector.shape_cast %159 : vector<1x8x8xf32> to vector<8x8xf32>
    %cst_86 = arith.constant dense<0.000000e+00> : vector<8x256xf32>
    %161 = tpu.matmul %160, %158, %cst_86 {dimension_numbers = #tpu.dot_dimension_numbers<[1], [0], [0], [1], [0, 0, 1, 1], [], []>} : vector<8x8xf32>, vector<8x256xf32>, vector<8x256xf32> -> vector<8x256xf32>
    %162 = arith.addf %153, %161 : vector<8x256xf32>
    %c241_i32_87 = arith.constant 241 : i32
    %163 = tpu.dynamic_rotate %114 by %c241_i32_87 dim 1 : vector<8x256xf32>, i32 -> vector<8x256xf32>
    %cst_88 = arith.constant 0.000000e+00 : f32
    %164 = vector.shape_cast %27 : vector<1x256xi1> to vector<1x256xi1>
    %165 = vector.broadcast %164 : vector<1x256xi1> to vector<8x256xi1>
    %166 = vector.broadcast %cst_88 : f32 to vector<8x256xf32>
    %167 = arith.select %165, %163, %166 : vector<8x256xi1>, vector<8x256xf32>
    %c6_89 = arith.constant 6 : index
    %c0_90 = arith.constant 0 : index
    %c0_91 = arith.constant 0 : index
    %168 = vector.load %arg4[%c6_89, %c0_90, %c0_91] : memref<9x8x8xf32, #tpu.memory_space<vmem>>, vector<1x8x8xf32>
    %169 = vector.shape_cast %168 : vector<1x8x8xf32> to vector<8x8xf32>
    %cst_92 = arith.constant dense<0.000000e+00> : vector<8x256xf32>
    %170 = tpu.matmul %169, %167, %cst_92 {dimension_numbers = #tpu.dot_dimension_numbers<[1], [0], [0], [1], [0, 0, 1, 1], [], []>} : vector<8x8xf32>, vector<8x256xf32>, vector<8x256xf32> -> vector<8x256xf32>
    %171 = arith.addf %162, %170 : vector<8x256xf32>
    %c240_i32_93 = arith.constant 240 : i32
    %172 = tpu.dynamic_rotate %114 by %c240_i32_93 dim 1 : vector<8x256xf32>, i32 -> vector<8x256xf32>
    %cst_94 = arith.constant 0.000000e+00 : f32
    %173 = vector.shape_cast %29 : vector<1x256xi1> to vector<1x256xi1>
    %174 = vector.broadcast %173 : vector<1x256xi1> to vector<8x256xi1>
    %175 = vector.broadcast %cst_94 : f32 to vector<8x256xf32>
    %176 = arith.select %174, %172, %175 : vector<8x256xi1>, vector<8x256xf32>
    %c7_95 = arith.constant 7 : index
    %c0_96 = arith.constant 0 : index
    %c0_97 = arith.constant 0 : index
    %177 = vector.load %arg4[%c7_95, %c0_96, %c0_97] : memref<9x8x8xf32, #tpu.memory_space<vmem>>, vector<1x8x8xf32>
    %178 = vector.shape_cast %177 : vector<1x8x8xf32> to vector<8x8xf32>
    %cst_98 = arith.constant dense<0.000000e+00> : vector<8x256xf32>
    %179 = tpu.matmul %178, %176, %cst_98 {dimension_numbers = #tpu.dot_dimension_numbers<[1], [0], [0], [1], [0, 0, 1, 1], [], []>} : vector<8x8xf32>, vector<8x256xf32>, vector<8x256xf32> -> vector<8x256xf32>
    %180 = arith.addf %171, %179 : vector<8x256xf32>
    %c239_i32_99 = arith.constant 239 : i32
    %181 = tpu.dynamic_rotate %114 by %c239_i32_99 dim 1 : vector<8x256xf32>, i32 -> vector<8x256xf32>
    %cst_100 = arith.constant 0.000000e+00 : f32
    %182 = vector.shape_cast %34 : vector<1x256xi1> to vector<1x256xi1>
    %183 = vector.broadcast %182 : vector<1x256xi1> to vector<8x256xi1>
    %184 = vector.broadcast %cst_100 : f32 to vector<8x256xf32>
    %185 = arith.select %183, %181, %184 : vector<8x256xi1>, vector<8x256xf32>
    %c8_101 = arith.constant 8 : index
    %c0_102 = arith.constant 0 : index
    %c0_103 = arith.constant 0 : index
    %186 = vector.load %arg4[%c8_101, %c0_102, %c0_103] : memref<9x8x8xf32, #tpu.memory_space<vmem>>, vector<1x8x8xf32>
    %187 = vector.shape_cast %186 : vector<1x8x8xf32> to vector<8x8xf32>
    %cst_104 = arith.constant dense<0.000000e+00> : vector<8x256xf32>
    %188 = tpu.matmul %187, %185, %cst_104 {dimension_numbers = #tpu.dot_dimension_numbers<[1], [0], [0], [1], [0, 0, 1, 1], [], []>} : vector<8x8xf32>, vector<8x256xf32>, vector<8x256xf32> -> vector<8x256xf32>
    %189 = arith.addf %180, %188 : vector<8x256xf32>
    %c0_105 = arith.constant 0 : index
    %c0_106 = arith.constant 0 : index
    %190 = vector.load %arg5[%c0_105, %c0_106] : memref<8x1xf32, #tpu.memory_space<vmem>>, vector<8x1xf32>
    %191 = vector.broadcast %190 : vector<8x1xf32> to vector<8x256xf32>
    %192 = arith.addf %189, %191 : vector<8x256xf32>
    %193 = arith.addf %192, %1 : vector<8x256xf32>
    %cst_107 = arith.constant 0.000000e+00 : f32
    %194 = vector.broadcast %cst_107 : f32 to vector<8x256xf32>
    %195 = arith.maximumf %193, %194 : vector<8x256xf32>
    %c0_108 = arith.constant 0 : index
    %c0_109 = arith.constant 0 : index
    %c0_110 = arith.constant 0 : index
    %196 = vector.load %arg6[%c0_108, %c0_109, %c0_110] : memref<1x8x256xf32, #tpu.memory_space<vmem>>, vector<1x8x256xf32>
    %197 = vector.shape_cast %196 : vector<1x8x256xf32> to vector<8x256xf32>
    %198 = vector.shape_cast %195 : vector<8x256xf32> to vector<1x8x256xf32>
    tpu.vector_store %arg6[%c0_108, %c0_109, %c0_110], %198 {strides = array<i32>} : memref<1x8x256xf32, #tpu.memory_space<vmem>>, vector<1x8x256xf32>,
    return
  }
  func.func @transform_0(%arg0: i32) -> (i32, i32, i32) {
    %c0_i32 = arith.constant 0 : i32
    %c0_i32_0 = arith.constant 0 : i32
    %c0_i32_1 = arith.constant 0 : i32
    return %arg0, %c0_i32, %c0_i32_0 : i32, i32, i32
  }
  func.func @transform_1(%arg0: i32) -> (i32, i32, i32) {
    %c0_i32 = arith.constant 0 : i32
    %c0_i32_0 = arith.constant 0 : i32
    %c0_i32_1 = arith.constant 0 : i32
    %c0_i32_2 = arith.constant 0 : i32
    return %c0_i32, %c0_i32_0, %c0_i32_1 : i32, i32, i32
  }
  func.func @transform_2(%arg0: i32) -> (i32, i32) {
    %c0_i32 = arith.constant 0 : i32
    %c0_i32_0 = arith.constant 0 : i32
    %c0_i32_1 = arith.constant 0 : i32
    return %c0_i32, %c0_i32_0 : i32, i32
  }
  func.func @transform_3(%arg0: i32) -> (i32, i32, i32) {
    %c0_i32 = arith.constant 0 : i32
    %c0_i32_0 = arith.constant 0 : i32
    %c0_i32_1 = arith.constant 0 : i32
    %c0_i32_2 = arith.constant 0 : i32
    return %c0_i32, %c0_i32_0, %c0_i32_1 : i32, i32, i32
  }
  func.func @transform_4(%arg0: i32) -> (i32, i32) {
    %c0_i32 = arith.constant 0 : i32
    %c0_i32_0 = arith.constant 0 : i32
    %c0_i32_1 = arith.constant 0 : i32
    return %c0_i32, %c0_i32_0 : i32, i32
  }
  func.func @transform_5(%arg0: i32) -> (i32, i32, i32) {
    %c0_i32 = arith.constant 0 : i32
    %c0_i32_0 = arith.constant 0 : i32
    %c0_i32_1 = arith.constant 0 : i32
    return %arg0, %c0_i32, %c0_i32_0 : i32, i32, i32
  }
}

</mosaic_0001>

<bundles_post_ra>
// kernel: tpu_custom_call.1
= control target key start
LH: loop header
LB: loop body
LE: loop exit
PB: predicated region body
PF: predicated region fallthrough
CT: control target
= control target key end

     0   :  { %10 = vsyncpa [#allocation3], 0  ;;  %s2607_s0 = inlined_call_operand.vmem [shape: f32[2,8,256], index: 0, kind: input, shape index: {}]   ;;  %s2608_s1 = inlined_call_operand.vmem [shape: f32[9,8,8], index: 1, kind: input, shape index: {}]   ;;  %s2609_s2 = inlined_call_operand.vmem [shape: f32[8,1], index: 2, kind: input, shape index: {}]   ;;  %s2610_s3 = inlined_call_operand.vmem [shape: f32[9,8,8], index: 3, kind: input, shape index: {}]   ;;  %s2611_s4 = inlined_call_operand.vmem [shape: f32[8,1], index: 4, kind: input, shape index: {}]   ;;  %s2612_s5 = inlined_call_operand.hbm [shape: f32[2,8,256], index: 5, kind: output, shape index: {}]  }
   0x1   :  { %12 = vsyncpa [#allocation3 + $0x1], 0  ;;  %s2172_s18 = smov 0   ;;  %s2174_s19 = smov 0  }
   0x2   :  { %s2176_s20 = smov 0   ;;  %s2178_s21 = smov 0  }
   0x3 LB: > { %s2193_s22 = sadd.s32 4294967295, %s2129_s21   ;;  %s1909_s23 = sadd.s32 4294967294, %s2129_s21   ;;  %s2129_s21 = sphi %s2178_s21, %s2639_s21   ;;  %s2125_s20 = sphi %s2176_s20, %s2638_s20   ;;  %s2121_s19 = sphi %s2174_s19, %s2637_s19   ;;  %s2117_s18 = sphi %s2172_s18, %s2636_s18  }
   0x4   : > { %s2197_s24 = sadd.s32 1, %s2129_s21   ;;  %s135_s25 = sadd.s32 1, %s2125_s20 }
   0x5   : > { %s132_s26 = ssub.s32 %s2129_s21, %s2197_s24  ;;  %p145_p0 = scmp.ne.s32.totalorder %s2125_s20, %s2121_s19 }
   0x6   : > { %p133_p1 = scmp.eq.s32.totalorder %s132_s26, 0  ;;  %p146_p2 = scmp.eq.s32.totalorder %s2193_s22, 1 }
   0x7   : > { %p151_p3 = scmp.ne.s32.totalorder %s2121_s19, %s2117_s18  ;;  %p152_p4 = scmp.eq.s32.totalorder %s1909_s23, 1 }
   0x8   : > { %s2208_s27 = scalar_select %p133_p1, %s2125_s20, %s135_s25  }
   0x9   : > { %p2210_p5 = por %p146_p2, %p145_p0  ;;  %p2214_p6 = por %p152_p4, %p151_p3 }
   0xa   : > { %p1912_p7 = scmp.ge.s32.totalorder %s2129_s21, 1  ;;  %p190_p8 = scmp.lt.s32.totalorder %s2129_s21, 3 }
   0xc   : > { %p191_p9 = pnand %p1912_p7, %p190_p8 }
   0xd   : > { %p218_p10 = scmp.lt.s32.totalorder (!%p191_p9), %s2193_s22, 1  ;;  %v2131_v0 = vmov (!%p191_p9), 0.0   ;;  %s2132_s10 = smov (!%p191_p9), 17   ;;  %v1050_v3 = vld [vmem:[%s2609_s2] sm:$0xff] (!%p191_p9)  ;;  %v2140_v4 = vmov (!%p191_p9), 0   ;;  %v225_v5 = vlaneseq (!%p191_p9)  ;;  %vm277_vm4 = vcmask (!%p191_p9), 64512  }
   0xe   : > { %194 = sbr.rel (%p191_p9) target bundleno = 847 (0x34f), region = 40  ;;  %345 = vmatprep.mubr.f32.mxu0 (!%p191_p9), %v2131_v0  ;;  %1146 = vmatprep.mubr.f32.mxu1 (!%p191_p9), %v2131_v0  ;;  %s2133_s11 = smov (!%p191_p9), 16   ;;  %v1916_v20 = vld [vmem:[%s2608_s1 + $0x8] sm:$0xff] (!%p191_p9)  ;;  %v261_v28 = vld [vmem:[%s2608_s1] sm:$0xff] (!%p191_p9)  ;;  %v1922_v32 = vld [vmem:[%s2608_s1 + $0x10] sm:$0xff] (!%p191_p9) }
   0xf   : > { %s2134_s12 = smov (!%p191_p9), 15   ;;  %s2135_s13 = smov (!%p191_p9), 1   ;;  %2066 = vset.pattern.permute.xlu0 (!%p191_p9), %v2140_v4  ;;  %v2266_v6 = vand.u32 (!%p191_p9), 127, %v225_v5  ;;  %v1926_v36 = vld [vmem:[%s2608_s1 + $0x18] sm:$0xff] (!%p191_p9)  ;;  %v1930_v41 = vld [vmem:[%s2608_s1 + $0x20] sm:$0xff] (!%p191_p9)  ;;  %v1932_v47 = vld [vmem:[%s2608_s1 + $0x28] sm:$0xff] (!%p191_p9) }
  0x10   : > { %s2136_s14 = smov (!%p191_p9), 127   ;;  %s2137_s15 = smov (!%p191_p9), 113   ;;  %v1936_v52 = vld [vmem:[%s2608_s1 + $0x30] sm:$0xff] (!%p191_p9)  ;;  %v1940_v56 = vld [vmem:[%s2608_s1 + $0x38] sm:$0xff] (!%p191_p9)  ;;  %v1943_v58 = vld [vmem:[%s2608_s1 + $0x40] sm:$0xff] (!%p191_p9) }
  0x11   : > { %s2138_s16 = smov (!%p191_p9), 112   ;;  %s2139_s17 = smov (!%p191_p9), 111   ;;  %v2269_v7 = vadd.s32 (!%p191_p9), 128, %v2266_v6  ;;  %v228_v8 = vand.u32 (!%p191_p9), 255, %v2266_v6  ;;  %vm252_vm0 = vcmp.lt.s32.totalorder (!%p191_p9), %v2266_v6, 17  ;;  %vm266_vm1 = vcmp.lt.s32.totalorder (!%p191_p9), %v2266_v6, 16 }
  0x12   : > { %vm430_vm7 = vcmp.lt.s32.totalorder (!%p191_p9), %v2266_v6, 15  ;;  %vm2614_vm10 = vcmp.lt.s32.totalorder (!%p191_p9), %v2266_v6, 1  ;;  %vm2613_vm12 = vcmp.lt.s32.totalorder (!%p191_p9), %v2266_v6, 127  ;;  %vm2615_vm13 = vcmp.lt.s32.totalorder (!%p191_p9), %v2266_v6, 113  ;;  %v1821_v5 = vld [vmem:[%s2611_s4] sm:$0xff] (!%p191_p9)  ;;  %v1971_v40 = vld [vmem:[%s2610_s3 + $0x38] sm:$0xff] (!%p191_p9) }
  0x13   : > { %v229_v9 = vand.u32 (!%p191_p9), 255, %v2269_v7  ;;  %v2273_v10 = vand.u32 (!%p191_p9), 15, %v228_v8  ;;  %vm2280_vm3 = vcmp.ge.s32.totalorder (!%p191_p9), %v228_v8, 16  ;;  %s2141_s25 = smov (!%p191_p9), [#allocation2]  }
  0x14   : > { %s2071_s26 = sshll.u32 (!%p191_p9), %s2141_s25, 4  ;;  %s2072_s26 = int_to_ptr.vmem [resolvable:$false] %s2071_s26 }
  0x15   : > { %s219_s30 = scalar_select %p218_p10, %s2193_s22, 1  ;;  %v2275_v13 = vand.u32 15, %v229_v9  ;;  %vm234_vm2 = vcmp.ge.s32.totalorder %v2273_v10, 1  ;;  %vm238_vm9 = vcmp.le.s32.totalorder %v2273_v10, 14  ;;  %vm2363_vm14 = vcmp.lt.s32.totalorder %v229_v9, 240 }
  0x16   : > { %vm2300_vm6 = vmand %vm2280_vm3, %vm234_vm2 }
  0x17   : > { %s1983_s6 = sshll.u32 %s219_s30, 4  ;;  %vm235_vm5 = vcmp.ge.s32.totalorder %v2275_v13, 1  ;;  %vm239_vm8 = vcmp.le.s32.totalorder %v2275_v13, 14  ;;  %vm2329_vm11 = vmand %vm2280_vm3, %vm238_vm9  ;;  %v1963_v13 = vld [vmem:[%s2610_s3 + $0x28] sm:$0xff]  ;;  %s2073_s30 = scalar_lea.vmem %s2072_s26, 512 }
  0x18   : > { %s222_s9 = scalar_lea.vmem %s2607_s0, %s1983_s6  ;;  %vm2378_vm15 = vmand %vm2363_vm14, %vm235_vm5 }
  0x19   : > { %v2227_v1 = vld [vmem:[%s222_s9] sm:$0xff]  ;;  %v2233_v2 = vld [vmem:[%s222_s9 + $0x8] sm:$0xff] }
  0x1a   : > { %248 = vrot.lane.b32.xlu1 %v2227_v1, %s2132_s10  ;;  %262 = vrot.lane.b32.xlu0 %v2227_v1, %s2133_s11 }
  0x1e   : > { %250 = vrot.lane.b32.xlu1 %v2233_v2, %s2132_s10  ;;  %264 = vrot.lane.b32.xlu0 %v2233_v2, %s2133_s11 }
  0x22   : > { %428 = vrot.lane.b32.xlu1 %v2233_v2, %s2134_s12  ;;  %426 = vrot.lane.b32.xlu0 %v2227_v1, %s2134_s12 }
  0x26   : > { %519 = vrot.lane.b32.xlu1 %v2233_v2, %s2135_s13  ;;  %517 = vrot.lane.b32.xlu0 %v2227_v1, %s2135_s13 }
  0x2a   : > { %688 = vrot.lane.b32.xlu1 %v2233_v2, %s2136_s14  ;;  %686 = vrot.lane.b32.xlu0 %v2227_v1, %s2136_s14 }
  0x2e   : > { %779 = vrot.lane.b32.xlu1 %v2233_v2, %s2137_s15  ;;  %777 = vrot.lane.b32.xlu0 %v2227_v1, %s2137_s15 }
  0x32   : > { %870 = vrot.lane.b32.xlu1 %v2233_v2, %s2138_s16  ;;  %868 = vrot.lane.b32.xlu0 %v2227_v1, %s2138_s16 }
  0x36   : > { %961 = vrot.lane.b32.xlu1 %v2233_v2, %s2139_s17  ;;  %959 = vrot.lane.b32.xlu0 %v2227_v1, %s2139_s17 }
  0x3a   : > { %1053 = vperm.xlu0 %2066, %v1050_v3  }
  0x8c   : > { %v249_v11 = vpop.permute.xlu1 %248  ;;  %v263_v12 = vpop.permute.xlu0 %262 }
  0x90   : > { %v251_v14 = vpop.permute.xlu1 %250  ;;  %v265_v15 = vpop.permute.xlu0 %264 }
  0x91   : > { %v253_v17 = vsel %vm252_vm0, %v249_v11, %v251_v14  ;;  %v267_v18 = vsel %vm266_vm1, %v263_v12, %v265_v15  ;;  %v268_v19 = vsel %vm266_vm1, %v265_v15, %v263_v12  ;;  %v254_v21 = vsel %vm252_vm0, %v251_v14, %v249_v11  ;;  %v1947_v14 = vld [vmem:[%s2610_s3 + $0x8] sm:$0xff] }
  0x92   : > { %281 = vmatprep.subr.mxu0 %v267_v18 }
  0x93   : > { %1917 = vmatpush1.msk.msra.mxu0 %vm2280_vm3, %v268_v19 }
  0x94   : > { %1918 = vmatmul.mubr.msk.f32.vlgmr.msra.gmra.mrb[0].mxu0 %vm277_vm4, %v1916_v20  ;;  %1919 = vmatprep.subr.msk.mxu0 %vm235_vm5, %v253_v17  ;;  %v429_v23 = vpop.permute.xlu1 %428  ;;  %v427_v24 = vpop.permute.xlu0 %426 }
  0x95   : > { %1920 = vmatpush1.msk.msra.mxu0 %vm2300_vm6, %v254_v21  ;;  %419 = vmatprep.mubr.f32.mxu0 %v2131_v0  ;;  %v431_v25 = vsel %vm430_vm7, %v427_v24, %v429_v23  ;;  %v432_v29 = vsel %vm430_vm7, %v429_v23, %v427_v24  ;;  %v1068_v21 = vld [vmem:[%s2610_s3] sm:$0xff] }
  0x96   : > { %1923 = vmatprep.subr.msk.mxu0 %vm239_vm8, %v431_v25 }
  0x98   : > { %v520_v26 = vpop.permute.xlu1 %519  ;;  %v518_v27 = vpop.permute.xlu0 %517 }
  0x99   : > { %v522_v31 = vsel %vm2614_vm10, %v518_v27, %v520_v26  ;;  %v523_v33 = vsel %vm2614_vm10, %v520_v26, %v518_v27  ;;  %vm963_vm10 = vcmp.lt.s32.totalorder %v2266_v6, 111  ;;  %v1953_v26 = vld [vmem:[%s2610_s3 + $0x10] sm:$0xff] }
  0x9c   : > { %1921 = vmatmul.mubr.msk.f32.vlgmr.msra.gmra.mrb[0].mxu0 %vm277_vm4, %v261_v28  ;;  %v689_v34 = vpop.permute.xlu1 %688  ;;  %v687_v35 = vpop.permute.xlu0 %686  ;;  %v1957_v28 = vld [vmem:[%s2610_s3 + $0x18] sm:$0xff] }
  0x9d   : > { %1924 = vmatpush1.msk.msra.mxu0 %vm2329_vm11, %v432_v29  ;;  %508 = vmatprep.mubr.f32.mxu0 %v2131_v0  ;;  %v692_v37 = vsel %vm2613_vm12, %v689_v34, %v687_v35  ;;  %v691_v42 = vsel %vm2613_vm12, %v687_v35, %v689_v34  ;;  %vm872_vm12 = vcmp.lt.s32.totalorder %v2266_v6, 112 }
  0x9e   : > { %1927 = vmatprep.subr.msk.mxu0 %vm235_vm5, %v522_v31 }
  0xa0   : > { %v780_v38 = vpop.permute.xlu1 %779  ;;  %v778_v39 = vpop.permute.xlu0 %777 }
  0xa1   : > { %v783_v43 = vsel %vm2615_vm13, %v780_v38, %v778_v39  ;;  %v782_v48 = vsel %vm2615_vm13, %v778_v39, %v780_v38  ;;  %vm2414_vm13 = vmand %vm2363_vm14, %vm239_vm8 }
  0xa4   : > { %1925 = vmatmul.mubr.msk.f32.vlgmr.msra.gmra.mrb[0].mxu0 %vm277_vm4, %v1922_v32  ;;  %v871_v45 = vpop.permute.xlu1 %870  ;;  %v869_v46 = vpop.permute.xlu0 %868  ;;  %v1961_v32 = vld [vmem:[%s2610_s3 + $0x20] sm:$0xff] }
  0xa5   : > { %1928 = vmatpush1.msk.msra.mxu0 %vm234_vm2, %v523_v33  ;;  %599 = vmatprep.mubr.f32.mxu0 %v2131_v0  ;;  %v874_v49 = vsel %vm872_vm12, %v871_v45, %v869_v46  ;;  %v873_v53 = vsel %vm872_vm12, %v869_v46, %v871_v45 }
  0xa6   : > { %613 = vmatprep.subr.mxu0 %v2233_v2 }
  0xa8   : > { %v962_v50 = vpop.permute.xlu1 %961  ;;  %v960_v51 = vpop.permute.xlu0 %959 }
  0xa9   : > { %v965_v54 = vsel %vm963_vm10, %v962_v50, %v960_v51  ;;  %v964_v57 = vsel %vm963_vm10, %v960_v51, %v962_v50 }
  0xac   : > { %1929 = vmatmul.mubr.msk.f32.vlgmr.msra.gmra.mrb[0].mxu0 %vm277_vm4, %v1926_v36 }
  0xad   : > { %614 = vmatpush1.msra.mxu0 %v2227_v1  ;;  %677 = vmatprep.mubr.f32.mxu0 %v2131_v0 }
  0xae   : > { %1933 = vmatprep.subr.msk.mxu0 %vm239_vm8, %v692_v37 }
  0xb4   : > { %1931 = vmatmul.mubr.msk.f32.vlgmr.msra.gmra.mrb[0].mxu0 %vm277_vm4, %v1930_v41 }
  0xb5   : > { %1934 = vmatpush1.msk.msra.mxu0 %vm238_vm9, %v691_v42  ;;  %768 = vmatprep.mubr.f32.mxu0 %v2131_v0  ;;  %v1967_v42 = vld [vmem:[%s2610_s3 + $0x30] sm:$0xff] }
  0xb6   : > { %1937 = vmatprep.subr.msk.mxu0 %vm2378_vm15, %v783_v43 }
  0xb9   : > { %v1054_v59 = vpop.permute.xlu0 %1053 }
  0xbc   : > { %1935 = vmatmul.mubr.msk.f32.vlgmr.msra.gmra.mrb[0].mxu0 %vm277_vm4, %v1932_v47 }
  0xbd   : > { %1938 = vmatpush1.msk.msra.mxu0 %vm234_vm2, %v782_v48  ;;  %859 = vmatprep.mubr.f32.mxu0 %v2131_v0  ;;  %v1974_v48 = vld [vmem:[%s2610_s3 + $0x40] sm:$0xff] }
  0xbe   : > { %1941 = vmatprep.subr.msk.mxu0 %vm2363_vm14, %v874_v49 }
  0xc4   : > { %1939 = vmatmul.mubr.msk.f32.vlgmr.msra.gmra.mrb[0].mxu0 %vm277_vm4, %v1936_v52 }
  0xc5   : > { %887 = vmatpush1.msra.mxu0 %v873_v53  ;;  %950 = vmatprep.mubr.f32.mxu0 %v2131_v0 }
  0xc6   : > { %1944 = vmatprep.subr.msk.mxu0 %vm2414_vm13, %v965_v54 }
  0xcc   : > { %1942 = vmatmul.mubr.msk.f32.vlgmr.msra.gmra.mrb[0].mxu0 %vm277_vm4, %v1940_v56 }
  0xcd   : > { %1945 = vmatpush1.msk.msra.mxu0 %vm238_vm9, %v964_v57  ;;  %1041 = vmatprep.mubr.f32.mxu0 %v2131_v0 }
  0xd4   : > { %1946 = vmatmul.mubr.msk.f32.vlgmr.msra.gmra.mrb[0].mxu0 %vm277_vm4, %v1943_v58 }
 0x1a7   : > { %v1043_v60 = vpop.f32.mrb[0].mxu0 }
 0x1a8   : > { %v1056_v61 = vadd.f32 %v1054_v59, %v1043_v60  ;;  %v1045_v62 = vpop.f32.mrb[1].mxu0 }
 0x1a9   : > { %v1057_v3 = vadd.f32 %v1054_v59, %v1045_v62 }
 0x1aa   : > { %v1058_v63 = vmax.f32 %v1056_v61, 0.0 }
 0x1ab   : > { %v1059_v4 = vmax.f32 %v1057_v3, 0.0 }
 0x1ac   : > { %1060 = vrot.lane.b32.xlu0 %v1058_v63, %s2132_s10  ;;  %1069 = vrot.lane.b32.xlu1 %v1058_v63, %s2133_s11 }
 0x1b0   : > { %1227 = vrot.lane.b32.xlu0 %v1058_v63, %s2134_s12  ;;  %1071 = vrot.lane.b32.xlu1 %v1059_v4, %s2133_s11 }
 0x1b4   : > { %1313 = vrot.lane.b32.xlu0 %v1058_v63, %s2135_s13  ;;  %1062 = vrot.lane.b32.xlu1 %v1059_v4, %s2132_s10 }
 0x1b8   : > { %1477 = vrot.lane.b32.xlu0 %v1058_v63, %s2136_s14  ;;  %1229 = vrot.lane.b32.xlu1 %v1059_v4, %s2134_s12 }
 0x1bc   : > { %1563 = vrot.lane.b32.xlu0 %v1058_v63, %s2137_s15  ;;  %1315 = vrot.lane.b32.xlu1 %v1059_v4, %s2135_s13  ;;  %s215_s13 = sand.u32 1, %s2121_s19  }
 0x1bd   : > { %s1836_s23 = scalar_lea.sflag [#allocation3], %s215_s13 }
 0x1c0   : > { %1649 = vrot.lane.b32.xlu0 %v1058_v63, %s2138_s16  ;;  %1479 = vrot.lane.b32.xlu1 %v1059_v4, %s2136_s14  ;;  %s1913_s14 = sshll.u32 %s215_s13, 4 }
 0x1c4   : > { %1735 = vrot.lane.b32.xlu0 %v1058_v63, %s2139_s17  ;;  %1565 = vrot.lane.b32.xlu1 %v1059_v4, %s2137_s15  ;;  %s1984_s15 = sshll.u32 %s2193_s22, 8 }
 0x1c5   : > { %s2565_s9 = scalar_lea.hbm %s2612_s5, %s1984_s15 }
 0x1c8   : > { %1824 = vperm.xlu0 %2066, %v1821_v5   ;;  %1651 = vrot.lane.b32.xlu1 %v1059_v4, %s2138_s16  ;;  %s217_s16 = scalar_lea.vmem [#allocation2], %s1913_s14 }
 0x1cc   : > { %1737 = vrot.lane.b32.xlu1 %v1059_v4, %s2139_s17  ;;  %s1850_s17 = sshll.u32 %s217_s16, 4  ;;  %s2567_s17 = int_to_ptr.vmem [resolvable:$true] %s1850_s17 }
 0x1cd   : > { %s2067_s22 = scalar_lea.vmem %s2567_s17, 256  ;;  %p2074_p0 = scmp.lt.s32.totalorder %s2567_s17, %s2072_s26 }
 0x1ce   : > { %p2068_p11 = scmp.ne.s32.totalorder %s2567_s17, %s2067_s22  ;;  %p2075_p1 = scmp.lt.s32.totalorder %s2073_s30, %s2067_s22 }
 0x1d0   : > { %p2069_p12 = pnand %p2068_p11, %p2210_p5  ;;  %p2076_p2 = por %p2075_p1, %p2074_p0 }
 0x1d2   : > { %p2070_p13 = pneg %p2069_p12 }
 0x1d4   : > { %p2077_p3 = pnand %p2076_p2, %p2070_p13 }
 0x21e   : > { %v1070_v7 = vpop.permute.xlu1 %1069  ;;  %v1061_v8 = vpop.permute.xlu0 %1060 }
 0x222   : > { %v1072_v9 = vpop.permute.xlu1 %1071  ;;  %v1228_v19 = vpop.permute.xlu0 %1227 }
 0x223   : > { %v1073_v11 = vsel %vm266_vm1, %v1070_v7, %v1072_v9  ;;  %v1074_v12 = vsel %vm266_vm1, %v1072_v9, %v1070_v7 }
 0x224   : > { %1082 = vmatprep.subr.mxu1 %v1073_v11 }
 0x225   : > { %1948 = vmatpush1.msk.msra.mxu1 %vm2280_vm3, %v1074_v12  ;;  %vm2632_vm3 = vcmp.lt.s32.totalorder %v2266_v6, 127 }
 0x226   : > { %1949 = vmatmul.mubr.msk.f32.vlgmr.msra.gmra.mrb[0].mxu1 %vm277_vm4, %v1947_v14  ;;  %v1063_v15 = vpop.permute.xlu1 %1062  ;;  %v1314_v23 = vpop.permute.xlu0 %1313 }
 0x227   : > { %v1064_v17 = vsel %vm252_vm0, %v1061_v8, %v1063_v15  ;;  %v1065_v18 = vsel %vm252_vm0, %v1063_v15, %v1061_v8  ;;  %1220 = vmatprep.mubr.f32.mxu1 %v2131_v0  ;;  %vm2630_vm0 = vcmp.lt.s32.totalorder %v2266_v6, 1 }
 0x228   : > { %1950 = vmatprep.subr.msk.mxu1 %vm235_vm5, %v1064_v17  ;;  %vm2631_vm1 = vmmov %vm2630_vm0 }
 0x229   : > { %1951 = vmatpush1.msk.msra.mxu1 %vm2300_vm6, %v1065_v18  ;;  %vm2634_vm6 = vcmp.lt.s32.totalorder %v2266_v6, 113 }
 0x22a   : > { %v1230_v16 = vpop.permute.xlu1 %1229  ;;  %v1478_v30 = vpop.permute.xlu0 %1477 }
 0x22b   : > { %v1231_v20 = vsel %vm430_vm7, %v1228_v19, %v1230_v16  ;;  %v1232_v24 = vsel %vm430_vm7, %v1230_v16, %v1228_v19  ;;  %vm2635_vm7 = vmmov %vm2634_vm6 }
 0x22c   : > { %1954 = vmatprep.subr.msk.mxu1 %vm239_vm8, %v1231_v20 }
 0x22e   : > { %1952 = vmatmul.mubr.msk.f32.vlgmr.msra.gmra.mrb[0].mxu1 %vm277_vm4, %v1068_v21  ;;  %v1316_v25 = vpop.permute.xlu1 %1315  ;;  %v1564_v34 = vpop.permute.xlu0 %1563 }
 0x22f   : > { %1955 = vmatpush1.msk.msra.mxu1 %vm2329_vm11, %v1232_v24  ;;  %v1317_v22 = vsel %vm2630_vm0, %v1314_v23, %v1316_v25  ;;  %1304 = vmatprep.mubr.f32.mxu1 %v2131_v0  ;;  %v1318_v27 = vsel %vm2631_vm1, %v1316_v25, %v1314_v23 }
 0x230   : > { %1958 = vmatprep.subr.msk.mxu1 %vm235_vm5, %v1317_v22  ;;  %vm2633_vm5 = vmmov %vm2632_vm3 }
 0x232   : > { %v1480_v29 = vpop.permute.xlu1 %1479  ;;  %v1650_v38 = vpop.permute.xlu0 %1649 }
 0x233   : > { %v1482_v31 = vsel %vm2632_vm3, %v1480_v29, %v1478_v30  ;;  %v1481_v35 = vsel %vm2633_vm5, %v1478_v30, %v1480_v29 }
 0x236   : > { %1956 = vmatmul.mubr.msk.f32.vlgmr.msra.gmra.mrb[0].mxu1 %vm277_vm4, %v1953_v26  ;;  %v1566_v33 = vpop.permute.xlu1 %1565  ;;  %v1736_v44 = vpop.permute.xlu0 %1735 }
 0x237   : > { %1959 = vmatpush1.msk.msra.mxu1 %vm234_vm2, %v1318_v27  ;;  %1390 = vmatprep.mubr.f32.mxu1 %v2131_v0  ;;  %v1568_v36 = vsel %vm2634_vm6, %v1566_v33, %v1564_v34  ;;  %v1567_v39 = vsel %vm2635_vm7, %v1564_v34, %v1566_v33 }
 0x238   : > { %1404 = vmatprep.subr.mxu1 %v1059_v4 }
 0x23a   : > { %v1652_v37 = vpop.permute.xlu1 %1651 }
 0x23b   : > { %v1654_v41 = vsel %vm872_vm12, %v1652_v37, %v1650_v38  ;;  %v1653_v45 = vsel %vm872_vm12, %v1650_v38, %v1652_v37 }
 0x23e   : > { %1960 = vmatmul.mubr.msk.f32.vlgmr.msra.gmra.mrb[0].mxu1 %vm277_vm4, %v1957_v28  ;;  %v1738_v43 = vpop.permute.xlu1 %1737 }
 0x23f   : > { %1405 = vmatpush1.msra.mxu1 %v1058_v63  ;;  %1468 = vmatprep.mubr.f32.mxu1 %v2131_v0  ;;  %v1740_v46 = vsel %vm963_vm10, %v1738_v43, %v1736_v44  ;;  %v1739_v47 = vsel %vm963_vm10, %v1736_v44, %v1738_v43 }
 0x240   : > { %1964 = vmatprep.subr.msk.mxu1 %vm239_vm8, %v1482_v31 }
 0x246   : > { %1962 = vmatmul.mubr.msk.f32.vlgmr.msra.gmra.mrb[0].mxu1 %vm277_vm4, %v1961_v32 }
 0x247   : > { %1965 = vmatpush1.msk.msra.mxu1 %vm238_vm9, %v1481_v35  ;;  %1554 = vmatprep.mubr.f32.mxu1 %v2131_v0  ;;  %v1825_v49 = vpop.permute.xlu0 %1824 }
 0x248   : > { %1968 = vmatprep.subr.msk.mxu1 %vm2378_vm15, %v1568_v36 }
 0x24e   : > { %1966 = vmatmul.mubr.msk.f32.vlgmr.msra.gmra.mrb[0].mxu1 %vm277_vm4, %v1963_v13 }
 0x24f   : > { %1969 = vmatpush1.msk.msra.mxu1 %vm234_vm2, %v1567_v39  ;;  %1640 = vmatprep.mubr.f32.mxu1 %v2131_v0 }
 0x250   : > { %1972 = vmatprep.subr.msk.mxu1 %vm2363_vm14, %v1654_v41 }
 0x256   : > { %1970 = vmatmul.mubr.msk.f32.vlgmr.msra.gmra.mrb[0].mxu1 %vm277_vm4, %v1967_v42 }
 0x257   : > { %1663 = vmatpush1.msra.mxu1 %v1653_v45  ;;  %1726 = vmatprep.mubr.f32.mxu1 %v2131_v0 }
 0x258   : > { %1975 = vmatprep.subr.msk.mxu1 %vm2414_vm13, %v1740_v46 }
 0x25e   : > { %1973 = vmatmul.mubr.msk.f32.vlgmr.msra.gmra.mrb[0].mxu1 %vm277_vm4, %v1971_v40 }
 0x25f   : > { %1976 = vmatpush1.msk.msra.mxu1 %vm238_vm9, %v1739_v47  ;;  %1812 = vmatprep.mubr.f32.mxu1 %v2131_v0 }
 0x266   : > { %1977 = vmatmul.mubr.msk.f32.vlgmr.msra.gmra.mrb[0].mxu1 %vm277_vm4, %v1974_v48 }
 0x339   : > { %v1814_v50 = vpop.f32.mrb[0].mxu1 }
 0x33a   : > { %v1827_v51 = vadd.f32 %v1825_v49, %v1814_v50  ;;  %v1816_v6 = vpop.f32.mrb[1].mxu1 }
 0x33b   : > { %v1828_v52 = vadd.f32 %v1825_v49, %v1816_v6 }
 0x33c   : > { %v1829_v53 = vadd.f32 %v1827_v51, %v2227_v1 }
 0x33d   : > { %v1830_v0 = vadd.f32 %v1828_v52, %v2233_v2 }
 0x33e   : > { %v1831_v10 = vmax.f32 %v1829_v53, 0.0 }
 0x33f   : > { %v1832_v54 = vmax.f32 %v1830_v0, 0.0 }
 0x340   : > { %1833 = vst [vmem:[%s217_s16] sm:$0xff] %v1831_v10 }
 0x341   : > { %1834 = vst [vmem:[%s217_s16 + $0x8] sm:$0xff] %v1832_v54 }
 0x342   : > { %2080 = shalt.err (!%p2077_p3)
}
 0x343   : > { %s2081_s11 = scalar_lea.hbm %s2565_s9, 256  ;;  %s2085_s12 = scalar_lea.hbm %s2612_s5, 512 }
 0x344   : > { %p2082_p4 = scmp.ne.s32.totalorder %s2565_s9, %s2081_s11  ;;  %p2086_p9 = scmp.lt.u32.totalorder %s2565_s9, %s2612_s5 }
 0x345   : > { %p2087_p10 = scmp.lt.u32.totalorder %s2085_s12, %s2081_s11  ;;  %p2089_p12 = scmp.lt.u32.totalorder %s2081_s11, %s2565_s9 }
 0x346   : > { %p2083_p7 = pnand %p2082_p4, %p2210_p5 }
 0x347   : > { %p2088_p11 = por %p2087_p10, %p2086_p9 }
 0x348   : > { %p2084_p8 = pneg %p2083_p7 }
 0x349   : > { %p2090_p13 = por %p2089_p12, %p2088_p11 }
 0x34b   : > { %p2091_p0 = pnand %p2090_p13, %p2084_p8 }
 0x34d   : > { %2094 = shalt.err (!%p2091_p0)
}
 0x34e   : > { %2017 = dma.vmem_to_hbm [thread:$0]  (%p2210_p5), %s2567_s17, 256, %s2565_s9, %s1836_s23  }
 0x34f PF: > { %p2023_p1 = scmp.ge.s32.totalorder %s2129_s21, 2  ;;  %s1862_s15 = sand.u32 1, %s2117_s18  }
 0x350   : > { %s1863_s16 = scalar_lea.sflag [#allocation3], %s1862_s15 }
 0x351   : > { %p2020_p2 = pnand %p2023_p1, %p2214_p6 }
 0x353   : > { %2112 = dma.done.wait (!%p2020_p2), %s1863_s16, 256  }
 0x354   : > { %2114 = vsyncadd (!%p2020_p2), %s1863_s16, 4294967040  ;;  %p15_p3 = scmp.ge.s32.totalorder %s2197_s24, 4   ;;  %s2636_s18 = smov %s2121_s19 }
 0x355   : > { %s2637_s19 = smov %s2125_s20  ;;  %s2638_s20 = smov %s2208_s27 }
 0x356   : > { %s2639_s21 = smov %s2197_s24  ;;  %17 = sbr.rel (!%p15_p3) target bundleno = 3 (0x3), region = 91 }
 0x35d   :  { %1868 = vsyncpa [#allocation3], 1 }
 0x35e   :  { %1870 = vsyncpa [#allocation3 + $0x1], 1 }

</bundles_post_ra>
